<compile_context>
chip_gen: v5e
topology: v5e:2x2
jax: 0.10.0
libtpu: 0.0.40
codegen_flags: <defaults>
</compile_context>

<pallas_src>
import functools

import jax
import jax.numpy as jnp
from jax.experimental import pallas as pl
from jax.experimental.pallas import tpu as pltpu


def _round_up(x, m):
    return ((x + m - 1) // m) * m


def _eqlv2_kernel(label_ref, cls_ref, pos_neg_ref, pos_grad_ref, neg_grad_ref,
                  loss_row_ref, new_pos_grad_ref, new_neg_grad_ref,
                  new_pos_neg_ref,
                  loss_acc, pos_acc, neg_acc, posw_sc, negw_sc,
                  *, num_classes, n_rows, tile_rows, gamma, mu, alpha):
    i = pl.program_id(0)
    t, c_pad = cls_ref.shape

    # ---- step 0: zero accumulators, build per-class weight rows ------------
    @pl.when(i == 0)
    def _init():
        loss_acc[...] = jnp.zeros_like(loss_acc)
        pos_acc[...] = jnp.zeros_like(pos_acc)
        neg_acc[...] = jnp.zeros_like(neg_acc)

        col1 = jax.lax.broadcasted_iota(jnp.int32, (1, c_pad), 1)
        is_fg = col1 < num_classes          # foreground classes
        is_real = col1 <= num_classes       # fg + background/objectness col
        pn = pos_neg_ref[...]
        # map_func(pos_neg) for fg classes, 1.0 for the bg column.
        neg_w = jnp.where(is_fg,
                          1.0 / (1.0 + jnp.exp(-gamma * (pn - mu))),
                          1.0)
        pos_w = 1.0 + alpha * (1.0 - neg_w)
        # Zero the padded lanes so they never contribute to loss or grads.
        negw_sc[...] = jnp.where(is_real, neg_w, 0.0)
        posw_sc[...] = jnp.where(is_real, pos_w, 0.0)

    # ---- steady state: one (T, 128) tile of proposals ------------------------
    x = cls_ref[...].astype(jnp.float32)                      # (T, C_pad)
    lab = label_ref[...]                                      # (T, 1) int32

    col = jax.lax.broadcasted_iota(jnp.int32, (t, c_pad), 1)
    is_pos = col == lab                                       # one-hot as bool

    # Row validity mask for the ragged last tile / wrapper row padding.
    row = jax.lax.broadcasted_iota(jnp.int32, (t, 1), 0) + i * tile_rows
    valid_row = row < n_rows                                  # (T, 1)

    pos_w = posw_sc[...]                                      # (1, C_pad)
    neg_w = negw_sc[...]
    w = jnp.where(is_pos, pos_w, neg_w)                       # (T, C_pad)
    w = jnp.where(valid_row, w, 0.0)

    # Shared exp(-|x|): used by both the BCE log term and the sigmoid.
    e = jnp.exp(-jnp.abs(x))

    # Numerically stable BCE with logits: max(x,0) - x*target + log1p(e).
    bce = jnp.maximum(x, 0.0) - jnp.where(is_pos, x, 0.0) + jnp.log1p(e)
    loss_acc[...] += jnp.sum(bce * w, axis=0, keepdims=True)

    # sigmoid(x) via shared e: r = 1/(1+e); prob = r (x>=0) else e*r.
    r = pl.reciprocal(1.0 + e, approx=True)
    prob = jnp.where(x >= 0.0, r, e * r)
    # |target*(prob-1) + (1-target)*prob| == (1-prob) on positives, prob else.
    gradv = jnp.where(is_pos, 1.0 - prob, prob)
    gw = gradv * w
    pos_part = jnp.where(is_pos, gw, 0.0)
    pos_sum = jnp.sum(pos_part, axis=0, keepdims=True)
    tot_sum = jnp.sum(gw, axis=0, keepdims=True)
    pos_acc[...] += pos_sum
    neg_acc[...] += tot_sum - pos_sum

    # ---- last step: write results ---------------------------------------------
    @pl.when(i == pl.num_programs(0) - 1)
    def _fin():
        loss_row_ref[...] = loss_acc[...]
        new_pos = pos_grad_ref[...] + pos_acc[...]
        new_neg = neg_grad_ref[...] + neg_acc[...]
        new_pos_grad_ref[...] = new_pos
        new_neg_grad_ref[...] = new_neg
        new_pos_neg_ref[...] = new_pos / (new_neg + 1e-10)


def eqlv2_forward(cls_score, label, pos_grad, neg_grad, pos_neg,
                  *, num_classes=88, gamma=12.0, mu=0.8, alpha=4.0,
                  loss_weight=1.0, tile_rows=1024):
    """Returns (loss, new_pos_grad, new_neg_grad, new_pos_neg)."""
    n_i, n_c = cls_score.shape
    assert n_c == num_classes + 1

    # Lane-dense class axis: pad to a multiple of 128.
    c_pad = _round_up(n_c, 128)
    # Proposal tile: multiple of 8 sublanes, no bigger than needed.
    t = max(8, (int(tile_rows) // 8) * 8)
    t = min(t, _round_up(n_i, 8))
    n_pad = _round_up(n_i, t)
    n_tiles = pl.cdiv(n_pad, t)

    # Glue (all cheap, lane-/row-padding only; no dtype up-cast of cls_score).
    cls_p = jnp.pad(cls_score, ((0, n_pad - n_i), (0, c_pad - n_c)))
    label_p = jnp.pad(label.astype(jnp.int32).reshape(n_i, 1),
                      ((0, n_pad - n_i), (0, 0)),
                      constant_values=c_pad)          # matches no lane

    def pad_row(v):
        v = v.astype(jnp.float32)
        return jnp.pad(v, (0, c_pad - v.shape[0])).reshape(1, c_pad)

    pos_neg_p = pad_row(pos_neg)
    pos_grad_p = pad_row(pos_grad)
    neg_grad_p = pad_row(neg_grad)

    kernel = functools.partial(
        _eqlv2_kernel, num_classes=num_classes, n_rows=n_i, tile_rows=t,
        gamma=float(gamma), mu=float(mu), alpha=float(alpha))

    row_spec = pl.BlockSpec((1, c_pad), lambda i: (0, 0))

    loss_row, npg, nng, npn = pl.pallas_call(
        kernel,
        grid=(n_tiles,),
        in_specs=[
            pl.BlockSpec((t, 1), lambda i: (i, 0)),       # label
            pl.BlockSpec((t, c_pad), lambda i: (i, 0)),   # cls_score (native dtype)
            row_spec,                                      # pos_neg
            row_spec,                                      # pos_grad
            row_spec,                                      # neg_grad
        ],
        out_specs=(row_spec, row_spec, row_spec, row_spec),
        out_shape=(
            jax.ShapeDtypeStruct((1, c_pad), jnp.float32),  # per-lane loss partials
            jax.ShapeDtypeStruct((1, c_pad), jnp.float32),  # new pos_grad
            jax.ShapeDtypeStruct((1, c_pad), jnp.float32),  # new neg_grad
            jax.ShapeDtypeStruct((1, c_pad), jnp.float32),  # new pos_neg
        ),
        scratch_shapes=[
            pltpu.VMEM((1, c_pad), jnp.float32),   # loss accumulator row
            pltpu.VMEM((1, c_pad), jnp.float32),   # pos grad accumulator
            pltpu.VMEM((1, c_pad), jnp.float32),   # neg grad accumulator
            pltpu.VMEM((1, c_pad), jnp.float32),   # pos_w row
            pltpu.VMEM((1, c_pad), jnp.float32),   # neg_w row
        ],
        compiler_params=pltpu.CompilerParams(
            dimension_semantics=("arbitrary",),
            vmem_limit_bytes=32 * 1024 * 1024),
    )(label_p, cls_p, pos_neg_p, pos_grad_p, neg_grad_p)

    loss = jnp.sum(loss_row) * (float(loss_weight) / n_i)
    return (loss,
            npg[0, :num_classes],
            nng[0, :num_classes],
            npn[0, :num_classes])


def _eqlv2_ref(cls_score, label, pos_grad, neg_grad, pos_neg,
               num_classes, gamma, mu, alpha, loss_weight):
    """Pure-JAX reference mirroring the PyTorch forward."""
    n_i, n_c = cls_score.shape
    x = cls_score.astype(jnp.float32)
    target = jax.nn.one_hot(label, n_c, dtype=jnp.float32)
    neg_w = jnp.concatenate(
        [1.0 / (1.0 + jnp.exp(-gamma * (pos_neg - mu))), jnp.ones((1,))])
    pos_w = 1.0 + alpha * (1.0 - neg_w)
    weight = pos_w[None, :] * target + neg_w[None, :] * (1.0 - target)
    bce = jnp.maximum(x, 0.0) - x * target + jnp.log1p(jnp.exp(-jnp.abs(x)))
    loss = loss_weight * jnp.sum(bce * weight) / n_i
    prob = jax.nn.sigmoid(x)
    grad = jnp.abs(target * (prob - 1.0) + (1.0 - target) * prob)
    pd = jnp.sum(grad * target * weight, axis=0)[:-1]
    nd = jnp.sum(grad * (1.0 - target) * weight, axis=0)[:-1]
    npg = pos_grad + pd
    nng = neg_grad + nd
    return loss, npg, nng, npg / (nng + 1e-10)


if __name__ == "__main__":
    num_classes = 88                      # module default
    n_c = num_classes + 1                 # +1 background/objectness channel
    n_i = 20                              # small batch of proposals

    key = jax.random.PRNGKey(0)
    k1, k2 = jax.random.split(key)
    cls_score = jax.random.normal(k1, (n_i, n_c), dtype=jnp.float32)
    label = jax.random.randint(k2, (n_i,), 0, n_c, dtype=jnp.int32)

    # Deterministic buffer initialization, matching __init__:
    pos_grad = jnp.zeros((num_classes,), jnp.float32)
    neg_grad = jnp.zeros((num_classes,), jnp.float32)
    pos_neg = jnp.ones((num_classes,), jnp.float32) * 100.0

    # tile_rows=8 -> 3 grid steps with a ragged final tile (exercises the
    # accumulator init/finalize path and the row-validity mask).
    out = eqlv2_forward(cls_score, label, pos_grad, neg_grad, pos_neg,
                        num_classes=num_classes, gamma=12.0, mu=0.8,
                        alpha=4.0, loss_weight=1.0, tile_rows=8)
    out = jax.block_until_ready(out)
    loss, npg, nng, npn = out

    # Also exercise the single-tile (default tile size) path.
    out_big = eqlv2_forward(cls_score, label, pos_grad, neg_grad, pos_neg,
                            num_classes=num_classes, gamma=12.0, mu=0.8,
                            alpha=4.0, loss_weight=1.0)
    out_big = jax.block_until_ready(out_big)

    ref = _eqlv2_ref(cls_score, label, pos_grad, neg_grad, pos_neg,
                     num_classes, 12.0, 0.8, 4.0, 1.0)

    # Loss path uses no approximate ops -> tight tolerance.
    assert jnp.allclose(loss, ref[0], rtol=1e-5, atol=1e-5), (loss, ref[0])
    assert jnp.allclose(out_big[0], ref[0], rtol=1e-5, atol=1e-5)
    # Gradient statistics use the approx EUP reciprocal for sigmoid -> looser.
    assert jnp.allclose(npg, ref[1], rtol=1e-2, atol=1e-3), (npg, ref[1])
    assert jnp.allclose(nng, ref[2], rtol=1e-2, atol=1e-3), (nng, ref[2])
    assert jnp.allclose(npn, ref[3], rtol=1e-2, atol=1e-3), (npn, ref[3])
    assert jnp.allclose(out_big[1], ref[1], rtol=1e-2, atol=1e-3)
    assert jnp.allclose(out_big[2], ref[2], rtol=1e-2, atol=1e-3)
    assert jnp.allclose(out_big[3], ref[3], rtol=1e-2, atol=1e-3)

    print("KERNEL_OK")
</pallas_src>

<mosaic_0001>
module attributes {stable_mosaic.version = 11 : i64} {
  func.func @_eqlv2_kernel(%arg0: i32, %arg1: memref<8x1xi32, #tpu.memory_space<vmem>>, %arg2: memref<8x128xf32, #tpu.memory_space<vmem>>, %arg3: memref<1x128xf32, #tpu.memory_space<vmem>>, %arg4: memref<1x128xf32, #tpu.memory_space<vmem>>, %arg5: memref<1x128xf32, #tpu.memory_space<vmem>>, %arg6: memref<1x128xf32, #tpu.memory_space<vmem>>, %arg7: memref<1x128xf32, #tpu.memory_space<vmem>>, %arg8: memref<1x128xf32, #tpu.memory_space<vmem>>, %arg9: memref<1x128xf32, #tpu.memory_space<vmem>>, %arg10: memref<1x128xf32, #tpu.memory_space<vmem>>, %arg11: memref<1x128xf32, #tpu.memory_space<vmem>>, %arg12: memref<1x128xf32, #tpu.memory_space<vmem>>, %arg13: memref<1x128xf32, #tpu.memory_space<vmem>>, %arg14: memref<1x128xf32, #tpu.memory_space<vmem>>) attributes {dimension_semantics = [#tpu.dimension_semantics<arbitrary>], iteration_bounds = array<i64: 3>, scalar_prefetch = 0 : i64, scratch_operands = 5 : i64, tpu.core_type = #tpu.core_type<tc>, window_params = [{transform_indices = @transform_0, window_bounds = array<i64: 8, 1>}, {transform_indices = @transform_1, window_bounds = array<i64: 8, 128>}, {pipeline_mode = #tpu.pipeline_mode<synchronous>, transform_indices = @transform_2, window_bounds = array<i64: 1, 128>}, {pipeline_mode = #tpu.pipeline_mode<synchronous>, transform_indices = @transform_3, window_bounds = array<i64: 1, 128>}, {pipeline_mode = #tpu.pipeline_mode<synchronous>, transform_indices = @transform_4, window_bounds = array<i64: 1, 128>}, {pipeline_mode = #tpu.pipeline_mode<synchronous>, transform_indices = @transform_5, window_bounds = array<i64: 1, 128>}, {pipeline_mode = #tpu.pipeline_mode<synchronous>, transform_indices = @transform_6, window_bounds = array<i64: 1, 128>}, {pipeline_mode = #tpu.pipeline_mode<synchronous>, transform_indices = @transform_7, window_bounds = array<i64: 1, 128>}, {pipeline_mode = #tpu.pipeline_mode<synchronous>, transform_indices = @transform_8, window_bounds = array<i64: 1, 128>}]} {
    %c0_i32 = arith.constant 0 : i32
    %0 = arith.cmpi eq, %arg0, %c0_i32 : i32
    %1 = arith.extui %0 : i1 to i32
    %c0_i32_0 = arith.constant 0 : i32
    %2 = arith.cmpi ne, %1, %c0_i32_0 : i32
    scf.if %2 {
      %cst_31 = arith.constant 0.000000e+00 : f32
      %69 = vector.broadcast %cst_31 : f32 to vector<1x128xf32>
      %c0_32 = arith.constant 0 : index
      %c0_33 = arith.constant 0 : index
      %70 = vector.load %arg10[%c0_32, %c0_33] : memref<1x128xf32, #tpu.memory_space<vmem>>, vector<1x128xf32>
      tpu.vector_store %arg10[%c0_32, %c0_33], %69 {strides = array<i32>} : memref<1x128xf32, #tpu.memory_space<vmem>>, vector<1x128xf32>,
      %cst_34 = arith.constant 0.000000e+00 : f32
      %71 = vector.broadcast %cst_34 : f32 to vector<1x128xf32>
      %c0_35 = arith.constant 0 : index
      %c0_36 = arith.constant 0 : index
      %72 = vector.load %arg11[%c0_35, %c0_36] : memref<1x128xf32, #tpu.memory_space<vmem>>, vector<1x128xf32>
      tpu.vector_store %arg11[%c0_35, %c0_36], %71 {strides = array<i32>} : memref<1x128xf32, #tpu.memory_space<vmem>>, vector<1x128xf32>,
      %cst_37 = arith.constant 0.000000e+00 : f32
      %73 = vector.broadcast %cst_37 : f32 to vector<1x128xf32>
      %c0_38 = arith.constant 0 : index
      %c0_39 = arith.constant 0 : index
      %74 = vector.load %arg12[%c0_38, %c0_39] : memref<1x128xf32, #tpu.memory_space<vmem>>, vector<1x128xf32>
      tpu.vector_store %arg12[%c0_38, %c0_39], %73 {strides = array<i32>} : memref<1x128xf32, #tpu.memory_space<vmem>>, vector<1x128xf32>,
      %75 = tpu.iota {dimensions = array<i32: 1>} : vector<1x128xi32>
      %c88_i32 = arith.constant 88 : i32
      %76 = vector.broadcast %c88_i32 : i32 to vector<1x128xi32>
      %77 = arith.cmpi slt, %75, %76 : vector<1x128xi32>
      %c88_i32_40 = arith.constant 88 : i32
      %78 = vector.broadcast %c88_i32_40 : i32 to vector<1x128xi32>
      %79 = arith.cmpi sle, %75, %78 : vector<1x128xi32>
      %c0_41 = arith.constant 0 : index
      %c0_42 = arith.constant 0 : index
      %80 = vector.load %arg3[%c0_41, %c0_42] : memref<1x128xf32, #tpu.memory_space<vmem>>, vector<1x128xf32>
      %cst_43 = arith.constant 8.000000e-01 : f32
      %81 = vector.broadcast %cst_43 : f32 to vector<1x128xf32>
      %82 = arith.subf %80, %81 : vector<1x128xf32>
      %cst_44 = arith.constant -1.200000e+01 : f32
      %83 = vector.broadcast %cst_44 : f32 to vector<1x128xf32>
      %84 = arith.mulf %83, %82 : vector<1x128xf32>
      %85 = math.exp %84 : vector<1x128xf32>
      %cst_45 = arith.constant 1.000000e+00 : f32
      %86 = vector.broadcast %cst_45 : f32 to vector<1x128xf32>
      %87 = arith.addf %86, %85 : vector<1x128xf32>
      %cst_46 = arith.constant 1.000000e+00 : f32
      %88 = vector.broadcast %cst_46 : f32 to vector<1x128xf32>
      %89 = arith.divf %88, %87 : vector<1x128xf32>
      %cst_47 = arith.constant 1.000000e+00 : f32
      %90 = vector.broadcast %cst_47 : f32 to vector<1x128xf32>
      %91 = arith.select %77, %89, %90 : vector<1x128xi1>, vector<1x128xf32>
      %cst_48 = arith.constant 1.000000e+00 : f32
      %92 = vector.broadcast %cst_48 : f32 to vector<1x128xf32>
      %93 = arith.subf %92, %91 : vector<1x128xf32>
      %cst_49 = arith.constant 4.000000e+00 : f32
      %94 = vector.broadcast %cst_49 : f32 to vector<1x128xf32>
      %95 = arith.mulf %94, %93 : vector<1x128xf32>
      %cst_50 = arith.constant 1.000000e+00 : f32
      %96 = vector.broadcast %cst_50 : f32 to vector<1x128xf32>
      %97 = arith.addf %96, %95 : vector<1x128xf32>
      %cst_51 = arith.constant 0.000000e+00 : f32
      %98 = vector.broadcast %cst_51 : f32 to vector<1x128xf32>
      %99 = arith.select %79, %91, %98 : vector<1x128xi1>, vector<1x128xf32>
      %c0_52 = arith.constant 0 : index
      %c0_53 = arith.constant 0 : index
      %100 = vector.load %arg14[%c0_52, %c0_53] : memref<1x128xf32, #tpu.memory_space<vmem>>, vector<1x128xf32>
      tpu.vector_store %arg14[%c0_52, %c0_53], %99 {strides = array<i32>} : memref<1x128xf32, #tpu.memory_space<vmem>>, vector<1x128xf32>,
      %cst_54 = arith.constant 0.000000e+00 : f32
      %101 = vector.broadcast %cst_54 : f32 to vector<1x128xf32>
      %102 = arith.select %79, %97, %101 : vector<1x128xi1>, vector<1x128xf32>
      %c0_55 = arith.constant 0 : index
      %c0_56 = arith.constant 0 : index
      %103 = vector.load %arg13[%c0_55, %c0_56] : memref<1x128xf32, #tpu.memory_space<vmem>>, vector<1x128xf32>
      tpu.vector_store %arg13[%c0_55, %c0_56], %102 {strides = array<i32>} : memref<1x128xf32, #tpu.memory_space<vmem>>, vector<1x128xf32>,
    } else {
    }
    %c0 = arith.constant 0 : index
    %c0_1 = arith.constant 0 : index
    %3 = vector.load %arg2[%c0, %c0_1] : memref<8x128xf32, #tpu.memory_space<vmem>>, vector<8x128xf32>
    %c0_2 = arith.constant 0 : index
    %c0_3 = arith.constant 0 : index
    %4 = vector.load %arg1[%c0_2, %c0_3] : memref<8x1xi32, #tpu.memory_space<vmem>>, vector<8x1xi32>
    %5 = tpu.iota {dimensions = array<i32: 1>} : vector<8x128xi32>
    %6 = vector.broadcast %4 : vector<8x1xi32> to vector<8x128xi32>
    %7 = arith.cmpi eq, %5, %6 : vector<8x128xi32>
    %8 = tpu.iota {dimensions = array<i32: 0>} : vector<8x1xi32>
    %c8_i32 = arith.constant 8 : i32
    %9 = arith.muli %arg0, %c8_i32 : i32
    %10 = vector.broadcast %9 : i32 to vector<8x1xi32>
    %11 = arith.addi %8, %10 : vector<8x1xi32>
    %c20_i32 = arith.constant 20 : i32
    %12 = vector.broadcast %c20_i32 : i32 to vector<8x1xi32>
    %13 = arith.cmpi slt, %11, %12 : vector<8x1xi32>
    %c0_4 = arith.constant 0 : index
    %c0_5 = arith.constant 0 : index
    %14 = vector.load %arg13[%c0_4, %c0_5] : memref<1x128xf32, #tpu.memory_space<vmem>>, vector<1x128xf32>
    %c0_6 = arith.constant 0 : index
    %c0_7 = arith.constant 0 : index
    %15 = vector.load %arg14[%c0_6, %c0_7] : memref<1x128xf32, #tpu.memory_space<vmem>>, vector<1x128xf32>
    %16 = vector.shape_cast %14 : vector<1x128xf32> to vector<1x128xf32>
    %17 = vector.broadcast %16 : vector<1x128xf32> to vector<8x128xf32>
    %18 = vector.shape_cast %15 : vector<1x128xf32> to vector<1x128xf32>
    %19 = vector.broadcast %18 : vector<1x128xf32> to vector<8x128xf32>
    %20 = arith.select %7, %17, %19 : vector<8x128xi1>, vector<8x128xf32>
    %cst = arith.constant 0.000000e+00 : f32
    %21 = vector.shape_cast %13 : vector<8x1xi1> to vector<8x1xi1>
    %22 = vector.broadcast %21 : vector<8x1xi1> to vector<8x128xi1>
    %23 = vector.broadcast %cst : f32 to vector<8x128xf32>
    %24 = arith.select %22, %20, %23 : vector<8x128xi1>, vector<8x128xf32>
    %25 = math.absf %3 : vector<8x128xf32>
    %cst_8 = arith.constant 0.000000e+00 : f32
    %26 = vector.broadcast %cst_8 : f32 to vector<8x128xf32>
    %27 = arith.subf %26, %25 : vector<8x128xf32>
    %28 = math.exp %27 : vector<8x128xf32>
    %cst_9 = arith.constant 0.000000e+00 : f32
    %29 = vector.broadcast %cst_9 : f32 to vector<8x128xf32>
    %30 = arith.maximumf %3, %29 : vector<8x128xf32>
    %cst_10 = arith.constant 0.000000e+00 : f32
    %31 = vector.broadcast %cst_10 : f32 to vector<8x128xf32>
    %32 = arith.select %7, %3, %31 : vector<8x128xi1>, vector<8x128xf32>
    %33 = arith.subf %30, %32 : vector<8x128xf32>
    %34 = math.log1p %28 : vector<8x128xf32>
    %35 = arith.addf %33, %34 : vector<8x128xf32>
    %c0_11 = arith.constant 0 : index
    %c0_12 = arith.constant 0 : index
    %36 = vector.load %arg10[%c0_11, %c0_12] : memref<1x128xf32, #tpu.memory_space<vmem>>, vector<1x128xf32>
    %37 = arith.mulf %35, %24 : vector<8x128xf32>
    %cst_13 = arith.constant dense<0.000000e+00> : vector<128xf32>
    %38 = vector.multi_reduction <add>, %37, %cst_13 [0] : vector<8x128xf32> to vector<128xf32>
    %39 = vector.shape_cast %38 : vector<128xf32> to vector<1x128xf32>
    %40 = arith.addf %36, %39 : vector<1x128xf32>
    %c0_14 = arith.constant 0 : index
    %c0_15 = arith.constant 0 : index
    %41 = vector.load %arg10[%c0_14, %c0_15] : memref<1x128xf32, #tpu.memory_space<vmem>>, vector<1x128xf32>
    tpu.vector_store %arg10[%c0_14, %c0_15], %40 {strides = array<i32>} : memref<1x128xf32, #tpu.memory_space<vmem>>, vector<1x128xf32>,
    %cst_16 = arith.constant 1.000000e+00 : f32
    %42 = vector.broadcast %cst_16 : f32 to vector<8x128xf32>
    %43 = arith.addf %42, %28 : vector<8x128xf32>
    %44 = tpu.reciprocal %43 {approx = true} : vector<8x128xf32> -> vector<8x128xf32>
    %cst_17 = arith.constant 0.000000e+00 : f32
    %45 = vector.broadcast %cst_17 : f32 to vector<8x128xf32>
    %46 = arith.cmpf oge, %3, %45 : vector<8x128xf32>
    %47 = arith.mulf %28, %44 : vector<8x128xf32>
    %48 = arith.select %46, %44, %47 : vector<8x128xi1>, vector<8x128xf32>
    %cst_18 = arith.constant 1.000000e+00 : f32
    %49 = vector.broadcast %cst_18 : f32 to vector<8x128xf32>
    %50 = arith.subf %49, %48 : vector<8x128xf32>
    %51 = arith.select %7, %50, %48 : vector<8x128xi1>, vector<8x128xf32>
    %52 = arith.mulf %51, %24 : vector<8x128xf32>
    %cst_19 = arith.constant 0.000000e+00 : f32
    %53 = vector.broadcast %cst_19 : f32 to vector<8x128xf32>
    %54 = arith.select %7, %52, %53 : vector<8x128xi1>, vector<8x128xf32>
    %cst_20 = arith.constant dense<0.000000e+00> : vector<128xf32>
    %55 = vector.multi_reduction <add>, %54, %cst_20 [0] : vector<8x128xf32> to vector<128xf32>
    %56 = vector.shape_cast %55 : vector<128xf32> to vector<1x128xf32>
    %cst_21 = arith.constant dense<0.000000e+00> : vector<128xf32>
    %57 = vector.multi_reduction <add>, %52, %cst_21 [0] : vector<8x128xf32> to vector<128xf32>
    %58 = vector.shape_cast %57 : vector<128xf32> to vector<1x128xf32>
    %c0_22 = arith.constant 0 : index
    %c0_23 = arith.constant 0 : index
    %59 = vector.load %arg11[%c0_22, %c0_23] : memref<1x128xf32, #tpu.memory_space<vmem>>, vector<1x128xf32>
    %60 = arith.addf %59, %56 : vector<1x128xf32>
    %c0_24 = arith.constant 0 : index
    %c0_25 = arith.constant 0 : index
    %61 = vector.load %arg11[%c0_24, %c0_25] : memref<1x128xf32, #tpu.memory_space<vmem>>, vector<1x128xf32>
    tpu.vector_store %arg11[%c0_24, %c0_25], %60 {strides = array<i32>} : memref<1x128xf32, #tpu.memory_space<vmem>>, vector<1x128xf32>,
    %c0_26 = arith.constant 0 : index
    %c0_27 = arith.constant 0 : index
    %62 = vector.load %arg12[%c0_26, %c0_27] : memref<1x128xf32, #tpu.memory_space<vmem>>, vector<1x128xf32>
    %63 = arith.subf %58, %56 : vector<1x128xf32>
    %64 = arith.addf %62, %63 : vector<1x128xf32>
    %c0_28 = arith.constant 0 : index
    %c0_29 = arith.constant 0 : index
    %65 = vector.load %arg12[%c0_28, %c0_29] : memref<1x128xf32, #tpu.memory_space<vmem>>, vector<1x128xf32>
    tpu.vector_store %arg12[%c0_28, %c0_29], %64 {strides = array<i32>} : memref<1x128xf32, #tpu.memory_space<vmem>>, vector<1x128xf32>,
    %c2_i32 = arith.constant 2 : i32
    %66 = arith.cmpi eq, %arg0, %c2_i32 : i32
    %67 = arith.extui %66 : i1 to i32
    %c0_i32_30 = arith.constant 0 : i32
    %68 = arith.cmpi ne, %67, %c0_i32_30 : i32
    scf.if %68 {
      %c0_31 = arith.constant 0 : index
      %c0_32 = arith.constant 0 : index
      %69 = vector.load %arg10[%c0_31, %c0_32] : memref<1x128xf32, #tpu.memory_space<vmem>>, vector<1x128xf32>
      %c0_33 = arith.constant 0 : index
      %c0_34 = arith.constant 0 : index
      %70 = vector.load %arg6[%c0_33, %c0_34] : memref<1x128xf32, #tpu.memory_space<vmem>>, vector<1x128xf32>
      tpu.vector_store %arg6[%c0_33, %c0_34], %69 {strides = array<i32>} : memref<1x128xf32, #tpu.memory_space<vmem>>, vector<1x128xf32>,
      %c0_35 = arith.constant 0 : index
      %c0_36 = arith.constant 0 : index
      %71 = vector.load %arg4[%c0_35, %c0_36] : memref<1x128xf32, #tpu.memory_space<vmem>>, vector<1x128xf32>
      %c0_37 = arith.constant 0 : index
      %c0_38 = arith.constant 0 : index
      %72 = vector.load %arg11[%c0_37, %c0_38] : memref<1x128xf32, #tpu.memory_space<vmem>>, vector<1x128xf32>
      %73 = arith.addf %71, %72 : vector<1x128xf32>
      %c0_39 = arith.constant 0 : index
      %c0_40 = arith.constant 0 : index
      %74 = vector.load %arg5[%c0_39, %c0_40] : memref<1x128xf32, #tpu.memory_space<vmem>>, vector<1x128xf32>
      %c0_41 = arith.constant 0 : index
      %c0_42 = arith.constant 0 : index
      %75 = vector.load %arg12[%c0_41, %c0_42] : memref<1x128xf32, #tpu.memory_space<vmem>>, vector<1x128xf32>
      %76 = arith.addf %74, %75 : vector<1x128xf32>
      %c0_43 = arith.constant 0 : index
      %c0_44 = arith.constant 0 : index
      %77 = vector.load %arg7[%c0_43, %c0_44] : memref<1x128xf32, #tpu.memory_space<vmem>>, vector<1x128xf32>
      tpu.vector_store %arg7[%c0_43, %c0_44], %73 {strides = array<i32>} : memref<1x128xf32, #tpu.memory_space<vmem>>, vector<1x128xf32>,
      %c0_45 = arith.constant 0 : index
      %c0_46 = arith.constant 0 : index
      %78 = vector.load %arg8[%c0_45, %c0_46] : memref<1x128xf32, #tpu.memory_space<vmem>>, vector<1x128xf32>
      tpu.vector_store %arg8[%c0_45, %c0_46], %76 {strides = array<i32>} : memref<1x128xf32, #tpu.memory_space<vmem>>, vector<1x128xf32>,
      %cst_47 = arith.constant 1.000000e-10 : f32
      %79 = vector.broadcast %cst_47 : f32 to vector<1x128xf32>
      %80 = arith.addf %76, %79 : vector<1x128xf32>
      %81 = arith.divf %73, %80 : vector<1x128xf32>
      %c0_48 = arith.constant 0 : index
      %c0_49 = arith.constant 0 : index
      %82 = vector.load %arg9[%c0_48, %c0_49] : memref<1x128xf32, #tpu.memory_space<vmem>>, vector<1x128xf32>
      tpu.vector_store %arg9[%c0_48, %c0_49], %81 {strides = array<i32>} : memref<1x128xf32, #tpu.memory_space<vmem>>, vector<1x128xf32>,
    } else {
    }
    return
  }
  func.func @transform_0(%arg0: i32) -> (i32, i32) {
    %c0_i32 = arith.constant 0 : i32
    %c0_i32_0 = arith.constant 0 : i32
    return %arg0, %c0_i32 : i32, i32
  }
  func.func @transform_1(%arg0: i32) -> (i32, i32) {
    %c0_i32 = arith.constant 0 : i32
    %c0_i32_0 = arith.constant 0 : i32
    return %arg0, %c0_i32 : i32, i32
  }
  func.func @transform_2(%arg0: i32) -> (i32, i32) {
    %c0_i32 = arith.constant 0 : i32
    %c0_i32_0 = arith.constant 0 : i32
    %c0_i32_1 = arith.constant 0 : i32
    return %c0_i32, %c0_i32_0 : i32, i32
  }
  func.func @transform_3(%arg0: i32) -> (i32, i32) {
    %c0_i32 = arith.constant 0 : i32
    %c0_i32_0 = arith.constant 0 : i32
    %c0_i32_1 = arith.constant 0 : i32
    return %c0_i32, %c0_i32_0 : i32, i32
  }
  func.func @transform_4(%arg0: i32) -> (i32, i32) {
    %c0_i32 = arith.constant 0 : i32
    %c0_i32_0 = arith.constant 0 : i32
    %c0_i32_1 = arith.constant 0 : i32
    return %c0_i32, %c0_i32_0 : i32, i32
  }
  func.func @transform_5(%arg0: i32) -> (i32, i32) {
    %c0_i32 = arith.constant 0 : i32
    %c0_i32_0 = arith.constant 0 : i32
    %c0_i32_1 = arith.constant 0 : i32
    return %c0_i32, %c0_i32_0 : i32, i32
  }
  func.func @transform_6(%arg0: i32) -> (i32, i32) {
    %c0_i32 = arith.constant 0 : i32
    %c0_i32_0 = arith.constant 0 : i32
    %c0_i32_1 = arith.constant 0 : i32
    return %c0_i32, %c0_i32_0 : i32, i32
  }
  func.func @transform_7(%arg0: i32) -> (i32, i32) {
    %c0_i32 = arith.constant 0 : i32
    %c0_i32_0 = arith.constant 0 : i32
    %c0_i32_1 = arith.constant 0 : i32
    return %c0_i32, %c0_i32_0 : i32, i32
  }
  func.func @transform_8(%arg0: i32) -> (i32, i32) {
    %c0_i32 = arith.constant 0 : i32
    %c0_i32_0 = arith.constant 0 : i32
    %c0_i32_1 = arith.constant 0 : i32
    return %c0_i32, %c0_i32_0 : i32, i32
  }
}

</mosaic_0001>

<bundles_post_ra>
// kernel: tpu_custom_call.1
= control target key start
LH: loop header
LB: loop body
LE: loop exit
PB: predicated region body
PF: predicated region fallthrough
CT: control target
= control target key end

     0   :  { %14 = vsyncpa [#allocation8], 0  ;;  %s911_s0 = inlined_call_operand.vmem [shape: s32[24,1], index: 0, kind: input, shape index: {}]   ;;  %s912_s1 = inlined_call_operand.vmem [shape: f32[24,128], index: 1, kind: input, shape index: {}]   ;;  %s913_s2 = inlined_call_operand.vmem [shape: f32[1,128], index: 2, kind: input, shape index: {}]   ;;  %s914_s3 = inlined_call_operand.vmem [shape: f32[1,128], index: 3, kind: input, shape index: {}]   ;;  %s915_s4 = inlined_call_operand.vmem [shape: f32[1,128], index: 4, kind: input, shape index: {}]   ;;  %s916_s5 = inlined_call_operand.hbm [shape: f32[1,128], index: 5, kind: output, shape index: {0}]   ;;  %s917_s6 = inlined_call_operand.hbm [shape: f32[1,128], index: 6, kind: output, shape index: {1}]   ;;  %s918_s7 = inlined_call_operand.hbm [shape: f32[1,128], index: 7, kind: output, shape index: {2}]   ;;  %s919_s8 = inlined_call_operand.hbm [shape: f32[1,128], index: 8, kind: output, shape index: {3}]  }
   0x1   :  { %15 = vsyncpa [#allocation10], 0 }
   0x2   :  { %16 = vsyncpa [#allocation13], 0  ;;  %s839_s27 = smov 0  }
   0x3 LB: > { %s845_s28 = sadd.s32 4294967295, %s786_s27   ;;  %p586_p0 = scmp.ge.s32.totalorder %s786_s27, 1  ;;  %s786_s27 = sphi %s839_s27, %s22_s27  }
   0x4   : > { %p260_p1 = scmp.lt.s32.totalorder %s786_s27, 4 }
   0x6   : > { %p261_p2 = pnand %p586_p0, %p260_p1 }
   0x7   : > { %p292_p3 = scmp.lt.s32.totalorder (!%p261_p2), %s845_s28, 2  ;;  %p589_p4 = scmp.ne.s32.totalorder (!%p261_p2), %s845_s28, 0 }
   0x8   : > { %264 = sbr.rel (%p261_p2) target bundleno = 250 (0xfa), region = 40 }
   0xd   : > { %s293_s29 = scalar_select %p292_p3, %s845_s28, 2 }
   0xe   : > { %303 = sbr.rel (%p589_p4) target bundleno = 61 (0x3d), region = 44 }
   0xf   : > { %s587_s30 = sshll.u32 %s293_s29, 3 }
  0x10   : > { %s854_s11 = scalar_lea.vmem %s911_s0, %s587_s30  ;;  %s859_s14 = scalar_lea.vmem %s912_s1, %s587_s30 }
  0x13   : > { %v311_v0 = vld [vmem:[%s913_s2] sm:$0x1]  ;;  %v788_v1 = vmov 0.0   ;;  %v307_v8 = vlaneseq }
  0x14   : > { %304 = vst [vmem:[#allocation2] sm:$0x1] %v788_v1  ;;  %v590_v2 = vadd.f32 -0.8, %v311_v0 }
  0x15   : > { %305 = vst [vmem:[#allocation3] sm:$0x1] %v788_v1  ;;  %v308_v13 = vand.u32 127, %v307_v8 }
  0x16   : > { %306 = vst [vmem:[#allocation4] sm:$0x1] %v788_v1  ;;  %v313_v3 = vmul.f32 -12.0, %v590_v2 }
  0x17   : > { %vm309_vm4 = vcmp.lt.s32.totalorder %v308_v13, 88  ;;  %vm310_vm5 = vcmp.le.s32.totalorder %v308_v13, 88 }
  0x18   : > { %v314_v4 = vmul.f32 1.442695, %v313_v3 }
  0x1a   : > { %641 = vpow2.f32 %v314_v4 }
  0x20   : > { %v642_v5 = vpop.eup %641 }
  0x21   : > { %v316_v6 = vadd.f32 1.0, %v642_v5 }
  0x23   : > { %643 = vrcp.f32 %v316_v6  ;;  %v328_v10 = vand.u32 2147483648, %v316_v6  ;;  %vm322_vm0 = vweird.f32 %v316_v6  ;;  %v326_v12 = vand.u32 2147483647, %v316_v6 }
  0x25   : > { %v329_v15 = vor.u32 1.1754944e-38, %v328_v10  ;;  %vm327_vm3 = vcmp.eq.f32.partialorder %v326_v12, 8.507059e+37 }
  0x29   : > { %v644_v7 = vpop.eup %643 }
  0x2a   : > { %v318_v9 = vmul.f32 %v644_v7, %v316_v6  ;;  %vm323_vm1 = vweird.f32 %v644_v7 }
  0x2b   : > { %vm324_vm2 = vmor %vm322_vm0, %vm323_vm1 }
  0x2c   : > { %v319_v11 = vsub.f32 1.0, %v318_v9 }
  0x2e   : > { %v320_v14 = vmul.f32 %v644_v7, %v319_v11 }
  0x30   : > { %v321_v16 = vadd.f32 %v644_v7, %v320_v14 }
  0x32   : > { %v325_v17 = vsel %vm324_vm2, %v644_v7, %v321_v16 }
  0x33   : > { %v330_v18 = vsel %vm327_vm3, %v329_v15, %v325_v17 }
  0x34   : > { %v332_v19 = vsel %vm309_vm4, %v330_v18, 1.0 }
  0x35   : > { %v333_v20 = vsub.f32 1.0, %v332_v19  ;;  %v336_v21 = vsel %vm310_vm5, %v332_v19, 0.0 }
  0x36   : > { %337 = vst [vmem:[#allocation6] sm:$0x1] %v336_v21 }
  0x37   : > { %v334_v22 = vmul.f32 4.0, %v333_v20 }
  0x39   : > { %v335_v23 = vadd.f32 1.0, %v334_v22 }
  0x3b   : > { %v338_v24 = vsel %vm310_vm5, %v335_v23, 0.0 }
  0x3c   : > { %339 = vst [vmem:[#allocation5] sm:$0x1] %v338_v24 }
  0x3d PF: > { %v341_v25 = vld [vmem:[%s854_s11] sm:$0xff]  ;;  %v789_v26 = vmov 0   ;;  %v342_v34 = vlaneseq  ;;  %s591_s17 = sshll.u32 %s845_s28, 3  ;;  %p592_p5 = scmp.ne.s32.totalorder %s845_s28, 2 }
  0x3e   : > { %645 = vset.pattern.permute.xlu0 %v789_v26  ;;  %v340_v27 = vld [vmem:[%s859_s14] sm:$0xff]  ;;  %v351_v38 = vstv %s591_s17 }
  0x3f   : > { %345 = vperm.xlu0 %645, %v341_v25   ;;  %v366_v28 = vand.u32 2147483647, %v340_v27  ;;  %v349_v37 = vshrl.u32 %v342_v34, 7  ;;  %vm395_vm6 = vcmp.ge.f32.partialorder %v340_v27, 0.0  ;;  %v343_v44 = vand.u32 127, %v342_v34 }
  0x40   : > { %v647_v46 = vld [vmem:[#allocation6] ss:$0 sm:$0xff]  ;;  %v370_v50 = vmax.f32 %v340_v27, 0.0  ;;  %v414_v12 = vld [vmem:[#allocation3] sm:$0x1] }
  0x41   : > { %v367_v29 = vsub.f32 0.0, %v366_v28  ;;  %v352_v43 = vadd.s32 %v351_v38, %v349_v37  ;;  %v383_v16 = vld [vmem:[#allocation2] sm:$0x1]  ;;  %v417_v17 = vld [vmem:[#allocation4] sm:$0x1] }
  0x43   : > { %v368_v30 = vmul.f32 1.442695, %v367_v29  ;;  %v646_v45 = vld [vmem:[#allocation5] ss:$0 sm:$0xff]  ;;  %vm353_vm8 = vcmp.lt.s32.totalorder %v352_v43, 20 }
  0x45   : > { %648 = vpow2.f32 %v368_v30 }
  0x4b   : > { %v649_v31 = vpop.eup %648 }
  0x4c   : > { %v373_v32 = vadd.f32 1.0, %v649_v31  ;;  %v376_v35 = vmul.f32 -0.5, %v649_v31  ;;  %v379_v41 = vand.u32 2147483647, %v649_v31 }
  0x4e   : > { %650 = vrcp.f32 %v373_v32  ;;  %v377_v39 = vadd.f32 1.0, %v376_v35  ;;  %vm380_vm7 = vcmp.lt.f32.partialorder %v379_v41, 0.0004427343 }
  0x4f   : > { %652 = vlog2.f32 %v373_v32 }
  0x50   : > { %v378_v48 = vmul.f32 %v649_v31, %v377_v39 }
  0x54   : > { %v651_v33 = vpop.eup %650 }
  0x55   : > { %v396_v36 = vmul.f32 %v651_v33, %v649_v31  ;;  %v653_v40 = vpop.eup %652 }
  0x56   : > { %v375_v47 = vmul.f32 0.6931472, %v653_v40 }
  0x57   : > { %v397_v42 = vsel %vm395_vm6, %v651_v33, %v396_v36 }
  0x58   : > { %v398_v49 = vsub.f32 1.0, %v397_v42  ;;  %v381_v54 = vsel %vm380_vm7, %v378_v48, %v375_v47 }
  0xb1   : > { %v346_v51 = vpop.permute.xlu0 %345 }
  0xb2   : > { %vm347_vm9 = vcmp.eq.s32.totalorder %v343_v44, %v346_v51 }
  0xb3   : > { %v362_v52 = vsel %vm347_vm9, %v646_v45, %v647_v46  ;;  %v371_v53 = vsel %vm347_vm9, %v340_v27, 0.0  ;;  %v399_v55 = vsel %vm347_vm9, %v398_v49, %v397_v42 }
  0xb4   : > { %v365_v56 = vsel %vm353_vm8, %v362_v52, 0.0  ;;  %v372_v57 = vsub.f32 %v370_v50, %v371_v53 }
  0xb5   : > { %v400_v58 = vmul.f32 %v399_v55, %v365_v56 }
  0xb6   : > { %v382_v59 = vadd.f32 %v381_v54, %v372_v57 }
  0xb7   : > { %v401_v60 = vsel %vm347_vm9, %v400_v58, 0.0  ;;  %v408_v61 = vrot.slane %v400_v58, 4 }
  0xb8   : > { %v384_v62 = vmul.f32 %v382_v59, %v365_v56  ;;  %v402_v63 = vrot.slane %v401_v60, 4 }
  0xb9   : > { %v409_v0 = vadd.f32 %v408_v61, %v400_v58 }
  0xba   : > { %v385_v1 = vrot.slane %v384_v62, 4  ;;  %v403_v2 = vadd.f32 %v402_v63, %v401_v60 }
  0xbb   : > { %v410_v3 = vrot.slane %v409_v0, 2 }
  0xbc   : > { %v386_v4 = vadd.f32 %v385_v1, %v384_v62  ;;  %v404_v5 = vrot.slane %v403_v2, 2 }
  0xbd   : > { %v411_v6 = vadd.f32 %v410_v3, %v409_v0 }
  0xbe   : > { %v387_v7 = vrot.slane %v386_v4, 2  ;;  %v405_v8 = vadd.f32 %v404_v5, %v403_v2 }
  0xbf   : > { %v412_v9 = vrot.slane %v411_v6, 1 }
  0xc0   : > { %v388_v10 = vadd.f32 %v387_v7, %v386_v4  ;;  %v406_v11 = vrot.slane %v405_v8, 1 }
  0xc1   : > { %v413_v13 = vadd.f32 %v412_v9, %v411_v6 }
  0xc2   : > { %v389_v14 = vrot.slane %v388_v10, 1  ;;  %v407_v15 = vadd.f32 %v406_v11, %v405_v8 }
  0xc4   : > { %v390_v18 = vadd.f32 %v389_v14, %v388_v10  ;;  %v415_v19 = vadd.f32 %v414_v12, %v407_v15  ;;  %v418_v20 = vsub.f32 %v413_v13, %v407_v15 }
  0xc5   : > { %424 = sbr.rel (%p592_p5) target bundleno = 233 (0xe9), region = 48 }
  0xc6   : > { %v391_v21 = vadd.f32 %v390_v18, %v383_v16  ;;  %416 = vst [vmem:[#allocation3] sm:$0x1] %v415_v19  ;;  %v419_v22 = vadd.f32 %v418_v20, %v417_v17 }
  0xc8   : > { %392 = vst [vmem:[#allocation2] sm:$0x1] %v391_v21 }
  0xc9   : > { %420 = vst [vmem:[#allocation4] sm:$0x1] %v419_v22 }
  0xca   : > { %v427_v24 = vld [vmem:[%s914_s3] sm:$0x1] }
  0xcb   : > { %v430_v27 = vld [vmem:[%s915_s4] sm:$0x1] }
  0xcd   : > { %v428_v25 = vld [vmem:[#allocation3] sm:$0x1] }
  0xce   : > { %v429_v26 = vadd.f32 %v428_v25, %v427_v24 }
  0xcf   : > { %v425_v23 = vld [vmem:[#allocation2] sm:$0x1] }
  0xd0   : > { %426 = vst [vmem:[#allocation7] sm:$0x1] %v425_v23  ;;  %v431_v28 = vld [vmem:[#allocation4] sm:$0x1] }
  0xd1   : > { %v432_v29 = vadd.f32 %v431_v28, %v430_v27  ;;  %433 = vst [vmem:[#allocation9] sm:$0x1] %v429_v26 }
  0xd3   : > { %434 = vst [vmem:[#allocation11] sm:$0x1] %v432_v29  ;;  %v435_v30 = vadd.f32 1e-10, %v432_v29 }
  0xd5   : > { %654 = vrcp.f32 %v435_v30  ;;  %v447_v33 = vand.u32 2147483648, %v435_v30  ;;  %vm441_vm10 = vweird.f32 %v435_v30  ;;  %v445_v35 = vand.u32 2147483647, %v435_v30 }
  0xd7   : > { %v448_v37 = vor.u32 1.1754944e-38, %v447_v33  ;;  %vm446_vm13 = vcmp.eq.f32.partialorder %v445_v35, 8.507059e+37 }
  0xdb   : > { %v655_v31 = vpop.eup %654 }
  0xdc   : > { %v437_v32 = vmul.f32 %v655_v31, %v435_v30  ;;  %vm442_vm11 = vweird.f32 %v655_v31 }
  0xdd   : > { %vm443_vm12 = vmor %vm441_vm10, %vm442_vm11 }
  0xde   : > { %v438_v34 = vsub.f32 1.0, %v437_v32 }
  0xe0   : > { %v439_v36 = vmul.f32 %v655_v31, %v438_v34 }
  0xe2   : > { %v440_v38 = vadd.f32 %v655_v31, %v439_v36 }
  0xe4   : > { %v444_v39 = vsel %vm443_vm12, %v655_v31, %v440_v38 }
  0xe5   : > { %v449_v40 = vsel %vm446_vm13, %v448_v37, %v444_v39 }
  0xe6   : > { %v450_v41 = vmul.f32 %v449_v40, %v429_v26 }
  0xe8   : > { %451 = vst [vmem:[#allocation12] sm:$0x1] %v450_v41 }
  0xe9 PF: > { %p619_p6 = scmp.eq.s32.totalorder %s845_s28, 2  ;;  %s790_s22 = smov [#allocation9]  }
  0xea   : > { %s470_s23 = sshll.u32 %s790_s22, 4  ;;  %s472_s26 = sshll.u32 %s917_s6, 4  ;;  %s471_s23 = int_to_ptr.vmem [resolvable:$true] %s470_s23  ;;  %s473_s26 = int_to_ptr.hbm [resolvable:$true] %s472_s26 }
  0xeb   : > { %606 = dma.vmem_to_hbm [thread:$0]  (%p619_p6), %s471_s23, 16, %s473_s26, [#allocation10]  }
  0xec   : > { %s460_s9 = sshll.u32 %s916_s5, 4  ;;  %s791_s10 = smov [#allocation7]   ;;  %s461_s9 = int_to_ptr.hbm [resolvable:$true] %s460_s9 }
  0xed   : > { %s458_s11 = sshll.u32 %s791_s10, 4  ;;  %s792_s12 = smov [#allocation11]   ;;  %s459_s11 = int_to_ptr.vmem [resolvable:$true] %s458_s11 }
  0xee   : > { %604 = dma.vmem_to_hbm [thread:$0]  (%p619_p6), %s459_s11, 16, %s461_s9, [#allocation8]  }
  0xef   : > { %s482_s13 = sshll.u32 %s792_s12, 4  ;;  %s484_s16 = sshll.u32 %s918_s7, 4  ;;  %s483_s13 = int_to_ptr.vmem [resolvable:$true] %s482_s13  ;;  %s485_s16 = int_to_ptr.hbm [resolvable:$true] %s484_s16 }
  0xf0   : > { %608 = dma.vmem_to_hbm [thread:$0]  (%p619_p6), %s483_s13, 16, %s485_s16, [#allocation10]  }
  0xf1   : > { %s496_s19 = sshll.u32 %s919_s8, 4  ;;  %s793_s20 = smov [#allocation12]   ;;  %s497_s19 = int_to_ptr.hbm [resolvable:$true] %s496_s19 }
  0xf2   : > { %s494_s21 = sshll.u32 %s793_s20, 4  ;;  %s495_s21 = int_to_ptr.vmem [resolvable:$true] %s494_s21 }
  0xf3   : > { %610 = dma.vmem_to_hbm [thread:$0]  (%p619_p6), %s495_s21, 16, %s497_s19, [#allocation13]  }
  0xf4   : > { %773 = dma.done.wait (%p619_p6), [#allocation8], 16  }
  0xf5   : > { %775 = vsyncadd (%p619_p6), [#allocation8], 4294967280 }
  0xf6   : > { %777 = dma.done.wait (%p619_p6), [#allocation10], 32  }
  0xf7   : > { %779 = vsyncadd (%p619_p6), [#allocation10], 4294967264 }
  0xf8   : > { %781 = dma.done.wait (%p619_p6), [#allocation13], 16  }
  0xf9   : > { %783 = vsyncadd (%p619_p6), [#allocation13], 4294967280 }
  0xfa PF: > { %s22_s27 = sadd.s32 1, %s786_s27  }
  0xfb   : > { %p19_p7 = scmp.ge.s32.totalorder %s22_s27, 5  }
  0xfd   :  { %21 = sbr.rel (!%p19_p7) target bundleno = 3 (0x3), region = 102 }
 0x102   :  { %525 = vsyncpa [#allocation8], 1 }
 0x103   :  { %527 = vsyncpa [#allocation8 + $0x1], 1 }
 0x104   :  { %528 = vsyncpa [#allocation10], 1 }
 0x105   :  { %529 = vsyncpa [#allocation13], 1 }

</bundles_post_ra>
